<compile_context>
chip_gen: v5e
topology: v5e:2x2
jax: 0.10.0
libtpu: 0.0.40
codegen_flags: <defaults>
</compile_context>

<pallas_src>
import functools

import jax
import jax.numpy as jnp
from jax import lax
from jax.experimental import pallas as pl
from jax.experimental.pallas import tpu as pltpu


def _round_up(x, m):
    return ((x + m - 1) // m) * m


_TARGET_BLOCK_BYTES = 8 << 20   # ~8 MiB / input block: double-buffered it stays well
                                # inside v7x's 64 MiB VMEM and hits ~85%+ of HBM roofline.
_VMEM_LIMIT_BYTES = 40 << 20    # above v5e's 16 MiB scoped default, below v7x's 64 MiB.


def _concat_pool_kernel(x_ref, max_ref, avg_ref, max_acc, sum_acc, *,
                        hw, col_tile, ragged):
    """x_ref:   (TR, TC)  tile of the (B*C, H*W) input
       max_ref: (TR, 1)   per-row max   (written on the last reduction step)
       avg_ref: (TR, 1)   per-row mean  (written on the last reduction step)
       max_acc / sum_acc: (TR, 1) f32 VMEM accumulators, resident across the reduction axis
    """
    ci = pl.program_id(1)
    last = pl.num_programs(1) - 1

    @pl.when(ci == 0)
    def _init():
        max_acc[...] = jnp.full_like(max_acc, -jnp.inf)
        sum_acc[...] = jnp.zeros_like(sum_acc)

    x = x_ref[...]                                   # (TR, TC), native dtype

    def _accumulate(xm, xs_f32):
        # xm: native-dtype values for the max path (bf16 max is exact); xs_f32: f32 sum path.
        max_acc[...] = jnp.maximum(
            max_acc[...],
            jnp.max(xm, axis=1, keepdims=True).astype(jnp.float32))
        sum_acc[...] = sum_acc[...] + jnp.sum(xs_f32, axis=1, keepdims=True)

    if ragged:
        # Only the last reduction step can read past H*W: mask just that step and keep an
        # unmasked fast path for all full tiles (keeps the kernel HBM-bound on v7x).
        @pl.when(ci == last)
        def _masked():
            col = lax.broadcasted_iota(jnp.int32, (1, col_tile), 1)      # (1, TC)
            valid = col < (hw - ci * col_tile)                           # broadcasts over rows
            neg_inf = jnp.array(-jnp.inf, dtype=x.dtype)
            _accumulate(jnp.where(valid, x, neg_inf),
                        jnp.where(valid, x.astype(jnp.float32), 0.0))

        @pl.when(ci != last)
        def _full():
            _accumulate(x, x.astype(jnp.float32))
    else:
        _accumulate(x, x.astype(jnp.float32))

    @pl.when(ci == last)
    def _finalize():
        max_ref[...] = max_acc[...].astype(max_ref.dtype)
        avg_ref[...] = (sum_acc[...] * (1.0 / hw)).astype(avg_ref.dtype)


def adaptive_concat_pool2d(x_nchw, output_size=1):
    """PyTorch AdaptiveConcatPool2d forward.  x: (B, C, H, W) -> (B, 2*C, 1, 1)
    with max-pooled channels first, then avg-pooled channels (matches torch.cat order)."""
    if output_size != 1:
        # TODO(synk): general adaptive bins (sz > 1) not implemented; the module default
        # (sz=None -> output_size=1, i.e. global pooling) is what this kernel covers.
        raise NotImplementedError("only output_size=1 (the module default) is supported")
    if not jnp.issubdtype(x_nchw.dtype, jnp.floating):
        # TODO(synk): integer inputs need a different max identity / accumulator dtype.
        raise NotImplementedError("only floating-point inputs are supported")

    B, C, H, W = x_nchw.shape
    R, HW = B * C, H * W
    x2 = x_nchw.reshape(R, HW)   # rows = (b, c) on sublanes, spatial on lanes

    itemsize = jnp.dtype(x_nchw.dtype).itemsize
    sub = max(8, 32 // itemsize)             # sublane multiple: 8 f32 / 16 bf16 / 32 8-bit

    # Row tile: up to 512 rows, sublane aligned.  If that leaves a single row tile but R
    # can still be split, force >= 2 row tiles so both v7x TensorCores get a share.
    tr = min(512, _round_up(R, sub))
    if R > sub and pl.cdiv(R, tr) < 2:
        tr = _round_up(-(-R // 2), sub)

    # Column (spatial reduction) tile: lane-dense multiple of 128, sized so one input
    # block is ~_TARGET_BLOCK_BYTES (wider automatically for 16-/8-bit dtypes).
    tc = max(128, (_TARGET_BLOCK_BYTES // (tr * itemsize)) // 128 * 128)
    tc = min(tc, _round_up(HW, 128))

    grid = (pl.cdiv(R, tr), pl.cdiv(HW, tc))   # reduction axis last
    ragged = (HW % tc) != 0

    kernel = functools.partial(_concat_pool_kernel, hw=HW, col_tile=tc, ragged=ragged)

    max_out, avg_out = pl.pallas_call(
        kernel,
        out_shape=(jax.ShapeDtypeStruct((R, 1), x_nchw.dtype),
                   jax.ShapeDtypeStruct((R, 1), x_nchw.dtype)),
        grid_spec=pltpu.PrefetchScalarGridSpec(
            num_scalar_prefetch=0,
            grid=grid,
            in_specs=[pl.BlockSpec((tr, tc), lambda r, c: (r, c))],
            out_specs=[pl.BlockSpec((tr, 1), lambda r, c: (r, 0)),
                       pl.BlockSpec((tr, 1), lambda r, c: (r, 0))],
            scratch_shapes=[pltpu.VMEM((tr, 1), jnp.float32),
                            pltpu.VMEM((tr, 1), jnp.float32)]),
        compiler_params=pltpu.CompilerParams(
            dimension_semantics=("parallel", "arbitrary"),
            vmem_limit_bytes=_VMEM_LIMIT_BYTES),
    )(x2)

    return jnp.concatenate(
        [max_out.reshape(B, C, 1, 1), avg_out.reshape(B, C, 1, 1)], axis=1)


def reference_forward(x_nchw):
    """Pure-JAX reference: concat(global max pool, global avg pool) along channels."""
    mx = jnp.max(x_nchw, axis=(2, 3), keepdims=True)
    av = jnp.mean(x_nchw, axis=(2, 3), keepdims=True)
    return jnp.concatenate([mx, av], axis=1)


if __name__ == "__main__":
    key = jax.random.PRNGKey(0)

    # Main check: full (non-ragged) spatial tiles.
    B, C, H, W = 2, 4, 16, 16
    x = jax.random.normal(key, (B, C, H, W), dtype=jnp.float32)
    out = jax.block_until_ready(adaptive_concat_pool2d(x))
    ref = jax.block_until_ready(reference_forward(x))
    assert out.shape == (B, 2 * C, 1, 1), out.shape
    assert jnp.allclose(out, ref, atol=1e-5, rtol=1e-5), \
        f"max err {jnp.max(jnp.abs(out - ref))}"

    # Second check: ragged spatial extent (exercises the masked last reduction step).
    B2, C2, H2, W2 = 2, 4, 9, 13
    x2 = jax.random.normal(jax.random.PRNGKey(0), (B2, C2, H2, W2), dtype=jnp.float32)
    out2 = jax.block_until_ready(adaptive_concat_pool2d(x2))
    ref2 = jax.block_until_ready(reference_forward(x2))
    assert out2.shape == (B2, 2 * C2, 1, 1), out2.shape
    assert jnp.allclose(out2, ref2, atol=1e-5, rtol=1e-5), \
        f"max err {jnp.max(jnp.abs(out2 - ref2))}"

    print("KERNEL_OK")
</pallas_src>

<mosaic_0001>
module attributes {stable_mosaic.version = 11 : i64} {
  func.func @_concat_pool_kernel(%arg0: i32, %arg1: i32, %arg2: memref<8x256xf32, #tpu.memory_space<vmem>>, %arg3: memref<8x1xf32, #tpu.memory_space<vmem>>, %arg4: memref<8x1xf32, #tpu.memory_space<vmem>>, %arg5: memref<8x1xf32, #tpu.memory_space<vmem>>, %arg6: memref<8x1xf32, #tpu.memory_space<vmem>>) attributes {dimension_semantics = [#tpu.dimension_semantics<parallel>, #tpu.dimension_semantics<arbitrary>], iteration_bounds = array<i64: 1, 1>, scalar_prefetch = 0 : i64, scratch_operands = 2 : i64, tpu.core_type = #tpu.core_type<tc>, window_params = [{transform_indices = @transform_0, window_bounds = array<i64: 8, 256>}, {transform_indices = @transform_1, window_bounds = array<i64: 8, 1>}, {transform_indices = @transform_2, window_bounds = array<i64: 8, 1>}]} {
    %c0_i32 = arith.constant 0 : i32
    %0 = arith.cmpi eq, %arg1, %c0_i32 : i32
    %1 = arith.extui %0 : i1 to i32
    %c0_i32_0 = arith.constant 0 : i32
    %2 = arith.cmpi ne, %1, %c0_i32_0 : i32
    scf.if %2 {
      %cst_13 = arith.constant 0xFF800000 : f32
      %17 = vector.broadcast %cst_13 : f32 to vector<8x1xf32>
      %c0_14 = arith.constant 0 : index
      %c0_15 = arith.constant 0 : index
      %18 = vector.load %arg5[%c0_14, %c0_15] : memref<8x1xf32, #tpu.memory_space<vmem>>, vector<8x1xf32>
      tpu.vector_store %arg5[%c0_14, %c0_15], %17 {strides = array<i32>} : memref<8x1xf32, #tpu.memory_space<vmem>>, vector<8x1xf32>,
      %cst_16 = arith.constant 0.000000e+00 : f32
      %19 = vector.broadcast %cst_16 : f32 to vector<8x1xf32>
      %c0_17 = arith.constant 0 : index
      %c0_18 = arith.constant 0 : index
      %20 = vector.load %arg6[%c0_17, %c0_18] : memref<8x1xf32, #tpu.memory_space<vmem>>, vector<8x1xf32>
      tpu.vector_store %arg6[%c0_17, %c0_18], %19 {strides = array<i32>} : memref<8x1xf32, #tpu.memory_space<vmem>>, vector<8x1xf32>,
    } else {
    }
    %c0 = arith.constant 0 : index
    %c0_1 = arith.constant 0 : index
    %3 = vector.load %arg2[%c0, %c0_1] : memref<8x256xf32, #tpu.memory_space<vmem>>, vector<8x256xf32>
    %c0_2 = arith.constant 0 : index
    %c0_3 = arith.constant 0 : index
    %4 = vector.load %arg5[%c0_2, %c0_3] : memref<8x1xf32, #tpu.memory_space<vmem>>, vector<8x1xf32>
    %cst = arith.constant dense<0xFF800000> : vector<8xf32>
    %5 = vector.multi_reduction <maximumf>, %3, %cst [1] : vector<8x256xf32> to vector<8xf32>
    %6 = vector.shape_cast %5 : vector<8xf32> to vector<8x1xf32>
    %7 = arith.maximumf %4, %6 : vector<8x1xf32>
    %c0_4 = arith.constant 0 : index
    %c0_5 = arith.constant 0 : index
    %8 = vector.load %arg5[%c0_4, %c0_5] : memref<8x1xf32, #tpu.memory_space<vmem>>, vector<8x1xf32>
    tpu.vector_store %arg5[%c0_4, %c0_5], %7 {strides = array<i32>} : memref<8x1xf32, #tpu.memory_space<vmem>>, vector<8x1xf32>,
    %c0_6 = arith.constant 0 : index
    %c0_7 = arith.constant 0 : index
    %9 = vector.load %arg6[%c0_6, %c0_7] : memref<8x1xf32, #tpu.memory_space<vmem>>, vector<8x1xf32>
    %cst_8 = arith.constant dense<0.000000e+00> : vector<8xf32>
    %10 = vector.multi_reduction <add>, %3, %cst_8 [1] : vector<8x256xf32> to vector<8xf32>
    %11 = vector.shape_cast %10 : vector<8xf32> to vector<8x1xf32>
    %12 = arith.addf %9, %11 : vector<8x1xf32>
    %c0_9 = arith.constant 0 : index
    %c0_10 = arith.constant 0 : index
    %13 = vector.load %arg6[%c0_9, %c0_10] : memref<8x1xf32, #tpu.memory_space<vmem>>, vector<8x1xf32>
    tpu.vector_store %arg6[%c0_9, %c0_10], %12 {strides = array<i32>} : memref<8x1xf32, #tpu.memory_space<vmem>>, vector<8x1xf32>,
    %c0_i32_11 = arith.constant 0 : i32
    %14 = arith.cmpi eq, %arg1, %c0_i32_11 : i32
    %15 = arith.extui %14 : i1 to i32
    %c0_i32_12 = arith.constant 0 : i32
    %16 = arith.cmpi ne, %15, %c0_i32_12 : i32
    scf.if %16 {
      %c0_13 = arith.constant 0 : index
      %c0_14 = arith.constant 0 : index
      %17 = vector.load %arg5[%c0_13, %c0_14] : memref<8x1xf32, #tpu.memory_space<vmem>>, vector<8x1xf32>
      %c0_15 = arith.constant 0 : index
      %c0_16 = arith.constant 0 : index
      %18 = vector.load %arg3[%c0_15, %c0_16] : memref<8x1xf32, #tpu.memory_space<vmem>>, vector<8x1xf32>
      tpu.vector_store %arg3[%c0_15, %c0_16], %17 {strides = array<i32>} : memref<8x1xf32, #tpu.memory_space<vmem>>, vector<8x1xf32>,
      %c0_17 = arith.constant 0 : index
      %c0_18 = arith.constant 0 : index
      %19 = vector.load %arg6[%c0_17, %c0_18] : memref<8x1xf32, #tpu.memory_space<vmem>>, vector<8x1xf32>
      %cst_19 = arith.constant 3.906250e-03 : f32
      %20 = vector.broadcast %cst_19 : f32 to vector<8x1xf32>
      %21 = arith.mulf %19, %20 : vector<8x1xf32>
      %c0_20 = arith.constant 0 : index
      %c0_21 = arith.constant 0 : index
      %22 = vector.load %arg4[%c0_20, %c0_21] : memref<8x1xf32, #tpu.memory_space<vmem>>, vector<8x1xf32>
      tpu.vector_store %arg4[%c0_20, %c0_21], %21 {strides = array<i32>} : memref<8x1xf32, #tpu.memory_space<vmem>>, vector<8x1xf32>,
    } else {
    }
    return
  }
  func.func @transform_0(%arg0: i32, %arg1: i32) -> (i32, i32) {
    %c0_i32 = arith.constant 0 : i32
    return %arg0, %arg1 : i32, i32
  }
  func.func @transform_1(%arg0: i32, %arg1: i32) -> (i32, i32) {
    %c0_i32 = arith.constant 0 : i32
    %c0_i32_0 = arith.constant 0 : i32
    return %arg0, %c0_i32 : i32, i32
  }
  func.func @transform_2(%arg0: i32, %arg1: i32) -> (i32, i32) {
    %c0_i32 = arith.constant 0 : i32
    %c0_i32_0 = arith.constant 0 : i32
    return %arg0, %c0_i32 : i32, i32
  }
}

</mosaic_0001>

<bundles_post_ra>
// kernel: tpu_custom_call.1
= control target key start
LH: loop header
LB: loop body
LE: loop exit
PB: predicated region body
PF: predicated region fallthrough
CT: control target
= control target key end

     0   :  { %8 = vsyncpa [#allocation5], 0  ;;  %s92_s12 = smov [#allocation4]   ;;  %s125_s0 = inlined_call_operand.hbm [shape: f32[8,256], index: 0, kind: input, shape index: {}]   ;;  %s126_s1 = inlined_call_operand.vmem [shape: f32[8,1], index: 1, kind: output, shape index: {0}]   ;;  %s127_s2 = inlined_call_operand.vmem [shape: f32[8,1], index: 2, kind: output, shape index: {1}]  }
   0x1   :  { %s14_s11 = sshll.u32 %s125_s0, 4  ;;  %s16_s13 = sshll.u32 %s92_s12, 4  ;;  %s15_s11 = int_to_ptr.hbm [resolvable:$true] %s14_s11  ;;  %s17_s13 = int_to_ptr.vmem [resolvable:$true] %s16_s13 }
   0x2   :  { %19 = dma.hbm_to_vmem [thread:$0]  %s15_s11, 256, %s17_s13, [#allocation5]  }
   0x3   :  { %90 = dma.done.wait [#allocation5], 256  }
   0x4   :  { %91 = vsyncadd [#allocation5], 4294967040  ;;  %vm28_vm0 = vcmask 7168   ;;  %v93_v0 = vmov 0.0   ;;  %v31_v1 = vld [vmem:[#allocation4] sm:$0xff]  ;;  %v32_v2 = vld [vmem:[#allocation4 + $0x8] sm:$0xff] }
   0x5   :  { %30 = vst.msk [vmem:[#allocation3] sm:$0xff] %vm28_vm0, %v93_v0  ;;  %v41_v3 = vadd.f32 %v32_v2, %v31_v1  ;;  %v34_v4 = vmax.f32 %v31_v1, %v32_v2  ;;  %v94_v5 = vmov -inf  }
   0x6   :  { %29 = vst.msk [vmem:[#allocation2] sm:$0xff] %vm28_vm0, %v94_v5 }
   0x7   :  { %42 = vadd.xlane.f32.xlu0 %v41_v3 }
   0xc   :  { %v40_v6 = vld [vmem:[#allocation3] sm:$0xff] }
   0xd   :  { %v33_v9 = vld [vmem:[#allocation2] sm:$0xff] }
   0xf   :  { %35 = vmax.xlane.f32.xlu0 %v34_v4 }
  0x7a   :  { %v43_v7 = vpop.xlane.xlu0 %42 }
  0x7b   :  { %v44_v8 = vadd.f32 %v43_v7, %v40_v6 }
  0x7d   :  { %45 = vst.msk [vmem:[#allocation3] sm:$0xff] %vm28_vm0, %v44_v8 }
  0x82   :  { %v36_v10 = vpop.xlane.xlu0 %35 }
  0x83   :  { %v37_v11 = vmax.f32 %v33_v9, %v36_v10 }
  0x84   :  { %v51_v12 = vld [vmem:[#allocation3] sm:$0xff] }
  0x85   :  { %v52_v13 = vmul.f32 0.00390625, %v51_v12  ;;  %39 = vst.msk [vmem:[#allocation2] sm:$0xff] %vm28_vm0, %v37_v11 }
  0x87   :  { %53 = vst.msk [vmem:[%s127_s2] sm:$0xff] %vm28_vm0, %v52_v13 }
  0x8c   :  { %v49_v14 = vld [vmem:[#allocation2] sm:$0xff] }
  0x8d   :  { %50 = vst.msk [vmem:[%s126_s1] sm:$0xff] %vm28_vm0, %v49_v14 }
  0x8e   :  { %62 = vsyncpa [#allocation5], 1 }

</bundles_post_ra>
